<compile_context>
chip_gen: v7x
topology: tpu7x:2x2x1
jax: 0.10.0
libtpu: 0.0.40
codegen_flags: <defaults>
</compile_context>

<pallas_src>
import math

import jax
import jax.numpy as jnp
from jax import lax
from jax.experimental import pallas as pl
from jax.experimental.pallas import tpu as pltpu


def value_net_kernel(w1_ref, b1_ref, w2_ref, b2_ref, w3_ref, b3_ref,
                     x_ref, out_ref):
    """One batch tile.

    x_ref : [tile_b, state_dim] f32 (natural layout)
    w1    : [hidden, state_dim] bf16     b1 : [hidden, 1] f32
    w2    : [hidden, hidden]    bf16     b2 : [hidden, 1] f32
    w3    : [hidden, 1]         f32      b3 : [1, 1]      f32
    out   : [1, tile_b]         f32 (lane-dense value row)
    """
    x = x_ref[...].astype(jnp.bfloat16)                      # in-kernel cast

    # Layer 1: contract state_dim of both operands -> feature-major [hidden, tile_b]
    h1 = lax.dot_general(w1_ref[...], x, (((1,), (1,)), ((), ())),
                         preferred_element_type=jnp.float32)
    h1 = jnp.maximum(h1 + b1_ref[...], 0.0)

    # Layer 2: [hidden, hidden] @ [hidden, tile_b]
    h2 = jnp.dot(w2_ref[...], h1.astype(jnp.bfloat16),
                 preferred_element_type=jnp.float32)
    h2 = jnp.maximum(h2 + b2_ref[...], 0.0)

    # Layer 3 (M = 1) off the MXU: VPU multiply + XLU sublane reduce, in fp32.
    v = jnp.sum(w3_ref[...] * h2, axis=0, keepdims=True)     # [1, tile_b]
    out_ref[...] = (v + b3_ref[...]).astype(out_ref.dtype)


def _default_tile_b(batch):
    """>=2 tiles when possible (v7x megacore), tile multiple of 128, cap 2048."""
    if batch <= 128:
        return 128
    half = (batch + 1) // 2
    half = ((half + 127) // 128) * 128
    return min(2048, half)


def prepare_params(params):
    """One-time prep: bf16 weight cast (layers 1/2), fp32 w3 column, fp32 biases."""
    w1, b1, w2, b2, w3, b3 = params
    return (w1.astype(jnp.bfloat16), b1.astype(jnp.float32),
            w2.astype(jnp.bfloat16), b2.astype(jnp.float32),
            w3.T.astype(jnp.float32),            # [hidden, 1] column
            b3.reshape(1, 1).astype(jnp.float32))


def value_network_forward(state, prepared_params, tile_b=None):
    """state: [B, state_dim] f32 -> value: [B, 1] f32."""
    w1b, b1, w2b, b2, w3c, b3 = prepared_params
    B, state_dim = state.shape
    hidden = w1b.shape[0]

    if tile_b is None:
        tile_b = _default_tile_b(B)
    num_tiles = pl.cdiv(B, tile_b)

    # Weights/biases: full-extent blocks with constant index_map -> DMA'd once,
    # VMEM-resident across every batch tile.
    resident = lambda shape: pl.BlockSpec(shape, lambda i: (0, 0))

    flops = 2 * B * (hidden * state_dim + hidden * hidden + hidden)
    bytes_accessed = (B * state_dim * 4 + B * 4                      # x in, v out
                      + (hidden * state_dim + hidden * hidden) * 2   # bf16 weights
                      + (2 * hidden + hidden + 2) * 4)               # biases + w3 col

    out = pl.pallas_call(
        value_net_kernel,
        out_shape=jax.ShapeDtypeStruct((1, B), jnp.float32),
        grid=(num_tiles,),
        in_specs=[
            resident(w1b.shape), resident(b1.shape),
            resident(w2b.shape), resident(b2.shape),
            resident(w3c.shape), resident(b3.shape),
            pl.BlockSpec((tile_b, state_dim), lambda i: (i, 0)),
        ],
        out_specs=pl.BlockSpec((1, tile_b), lambda i: (0, i)),
        compiler_params=pltpu.CompilerParams(
            dimension_semantics=("parallel",),
        ),
        cost_estimate=pl.CostEstimate(
            flops=flops, transcendentals=0, bytes_accessed=bytes_accessed),
    )(w1b, b1, w2b, b2, w3c, b3, state)

    # PyTorch-shaped [B, 1] value (cheap layout plumbing; no padding to strip).
    return out.reshape(B, 1)


def init_params(key, state_dim, hidden_dim):
    """nn.Linear-style init, U(-1/sqrt(fan_in), +1/sqrt(fan_in)).

    Weights in PyTorch layout [out_features, in_features]; biases as
    [out_features, 1] (broadcast over the lane/batch axis).
    """
    keys = jax.random.split(key, 6)

    def linear(kw, kb, fan_in, fan_out):
        bound = 1.0 / math.sqrt(fan_in)
        w = jax.random.uniform(kw, (fan_out, fan_in), jnp.float32,
                               minval=-bound, maxval=bound)
        b = jax.random.uniform(kb, (fan_out, 1), jnp.float32,
                               minval=-bound, maxval=bound)
        return w, b

    w1, b1 = linear(keys[0], keys[1], state_dim, hidden_dim)
    w2, b2 = linear(keys[2], keys[3], hidden_dim, hidden_dim)
    w3, b3 = linear(keys[4], keys[5], hidden_dim, 1)
    return (w1, b1, w2, b2, w3, b3)


def reference_forward(state, params):
    """Pure-JAX fp32 reference of the PyTorch forward (x @ W.T + b)."""
    w1, b1, w2, b2, w3, b3 = params
    x = jnp.maximum(state @ w1.T + b1[:, 0], 0.0)
    x = jnp.maximum(x @ w2.T + b2[:, 0], 0.0)
    return x @ w3.T + b3[:, 0]


if __name__ == "__main__":
    key = jax.random.PRNGKey(0)
    k_params, k_state = jax.random.split(key)

    state_dim = 16
    hidden_dim = 128      # PyTorch module's default hidden_dim

    params = init_params(k_params, state_dim, hidden_dim)
    prepared = prepare_params(params)   # bf16 weight cast happens once, here

    # Batch of 256 -> 2 tiles of 128 (exercises the pipelined, parallel grid).
    batch = 256
    state = jax.random.normal(k_state, (batch, state_dim), jnp.float32)

    value = value_network_forward(state, prepared)
    value = jax.block_until_ready(value)

    ref = reference_forward(state, params)
    assert value.shape == (batch, 1)
    # bf16 matmul operands (fp32 accumulation, fp32 layer-3) -> loose tolerance.
    assert jnp.allclose(value, ref, atol=3e-2, rtol=3e-2), float(
        jnp.max(jnp.abs(value - ref)))

    # Ragged batch (200 rows): exercises the masked partial last block (no pad pass).
    batch2 = 200
    state2 = jax.random.normal(jax.random.PRNGKey(1), (batch2, state_dim),
                               jnp.float32)
    value2 = jax.block_until_ready(value_network_forward(state2, prepared))
    ref2 = reference_forward(state2, params)
    assert value2.shape == (batch2, 1)
    assert jnp.allclose(value2, ref2, atol=3e-2, rtol=3e-2), float(
        jnp.max(jnp.abs(value2 - ref2)))

    print("KERNEL_OK")
</pallas_src>

<mosaic_0001>
module attributes {stable_mosaic.version = 11 : i64} {
  func.func @value_net_kernel(%arg0: i32, %arg1: memref<128x16xbf16, #tpu.memory_space<vmem>>, %arg2: memref<128x1xf32, #tpu.memory_space<vmem>>, %arg3: memref<128x128xbf16, #tpu.memory_space<vmem>>, %arg4: memref<128x1xf32, #tpu.memory_space<vmem>>, %arg5: memref<128x1xf32, #tpu.memory_space<vmem>>, %arg6: memref<1x1xf32, #tpu.memory_space<vmem>>, %arg7: memref<128x16xf32, #tpu.memory_space<vmem>>, %arg8: memref<1x128xf32, #tpu.memory_space<vmem>>) attributes {dimension_semantics = [#tpu.dimension_semantics<parallel>], iteration_bounds = array<i64: 2>, scalar_prefetch = 0 : i64, scratch_operands = 0 : i64, tpu.core_type = #tpu.core_type<tc>, window_params = [{pipeline_mode = #tpu.pipeline_mode<synchronous>, transform_indices = @transform_0, window_bounds = array<i64: 128, 16>}, {pipeline_mode = #tpu.pipeline_mode<synchronous>, transform_indices = @transform_1, window_bounds = array<i64: 128, 1>}, {pipeline_mode = #tpu.pipeline_mode<synchronous>, transform_indices = @transform_2, window_bounds = array<i64: 128, 128>}, {pipeline_mode = #tpu.pipeline_mode<synchronous>, transform_indices = @transform_3, window_bounds = array<i64: 128, 1>}, {pipeline_mode = #tpu.pipeline_mode<synchronous>, transform_indices = @transform_4, window_bounds = array<i64: 128, 1>}, {pipeline_mode = #tpu.pipeline_mode<synchronous>, transform_indices = @transform_5, window_bounds = array<i64: 1, 1>}, {transform_indices = @transform_6, window_bounds = array<i64: 128, 16>}, {transform_indices = @transform_7, window_bounds = array<i64: 1, 128>}]} {
    %c0 = arith.constant 0 : index
    %c0_0 = arith.constant 0 : index
    %0 = vector.load %arg7[%c0, %c0_0] : memref<128x16xf32, #tpu.memory_space<vmem>>, vector<128x16xf32>
    %1 = arith.truncf %0 : vector<128x16xf32> to vector<128x16xbf16>
    %c0_1 = arith.constant 0 : index
    %c0_2 = arith.constant 0 : index
    %2 = vector.load %arg1[%c0_1, %c0_2] : memref<128x16xbf16, #tpu.memory_space<vmem>>, vector<128x16xbf16>
    %cst = arith.constant dense<0.000000e+00> : vector<128x128xf32>
    %3 = tpu.matmul %2, %1, %cst {dimension_numbers = #tpu.dot_dimension_numbers<[1], [1], [0], [0], [0, 0, 1, 0], [], []>} : vector<128x16xbf16>, vector<128x16xbf16>, vector<128x128xf32> -> vector<128x128xf32>
    %c0_3 = arith.constant 0 : index
    %c0_4 = arith.constant 0 : index
    %4 = vector.load %arg2[%c0_3, %c0_4] : memref<128x1xf32, #tpu.memory_space<vmem>>, vector<128x1xf32>
    %5 = vector.broadcast %4 : vector<128x1xf32> to vector<128x128xf32>
    %6 = arith.addf %3, %5 : vector<128x128xf32>
    %cst_5 = arith.constant 0.000000e+00 : f32
    %7 = vector.broadcast %cst_5 : f32 to vector<128x128xf32>
    %8 = arith.maximumf %6, %7 : vector<128x128xf32>
    %c0_6 = arith.constant 0 : index
    %c0_7 = arith.constant 0 : index
    %9 = vector.load %arg3[%c0_6, %c0_7] : memref<128x128xbf16, #tpu.memory_space<vmem>>, vector<128x128xbf16>
    %10 = arith.truncf %8 : vector<128x128xf32> to vector<128x128xbf16>
    %cst_8 = arith.constant dense<0.000000e+00> : vector<128x128xf32>
    %11 = tpu.matmul %9, %10, %cst_8 {dimension_numbers = #tpu.dot_dimension_numbers<[1], [0], [0], [1], [0, 0, 1, 1], [], []>} : vector<128x128xbf16>, vector<128x128xbf16>, vector<128x128xf32> -> vector<128x128xf32>
    %c0_9 = arith.constant 0 : index
    %c0_10 = arith.constant 0 : index
    %12 = vector.load %arg4[%c0_9, %c0_10] : memref<128x1xf32, #tpu.memory_space<vmem>>, vector<128x1xf32>
    %13 = vector.broadcast %12 : vector<128x1xf32> to vector<128x128xf32>
    %14 = arith.addf %11, %13 : vector<128x128xf32>
    %cst_11 = arith.constant 0.000000e+00 : f32
    %15 = vector.broadcast %cst_11 : f32 to vector<128x128xf32>
    %16 = arith.maximumf %14, %15 : vector<128x128xf32>
    %c0_12 = arith.constant 0 : index
    %c0_13 = arith.constant 0 : index
    %17 = vector.load %arg5[%c0_12, %c0_13] : memref<128x1xf32, #tpu.memory_space<vmem>>, vector<128x1xf32>
    %18 = vector.broadcast %17 : vector<128x1xf32> to vector<128x128xf32>
    %19 = arith.mulf %18, %16 : vector<128x128xf32>
    %cst_14 = arith.constant dense<0.000000e+00> : vector<128xf32>
    %20 = vector.multi_reduction <add>, %19, %cst_14 [0] : vector<128x128xf32> to vector<128xf32>
    %21 = vector.shape_cast %20 : vector<128xf32> to vector<1x128xf32>
    %c0_15 = arith.constant 0 : index
    %c0_16 = arith.constant 0 : index
    %22 = vector.load %arg6[%c0_15, %c0_16] : memref<1x1xf32, #tpu.memory_space<vmem>>, vector<1x1xf32>
    %23 = vector.broadcast %22 : vector<1x1xf32> to vector<1x128xf32>
    %24 = arith.addf %21, %23 : vector<1x128xf32>
    %c0_17 = arith.constant 0 : index
    %c0_18 = arith.constant 0 : index
    %25 = vector.load %arg8[%c0_17, %c0_18] : memref<1x128xf32, #tpu.memory_space<vmem>>, vector<1x128xf32>
    tpu.vector_store %arg8[%c0_17, %c0_18], %24 {strides = array<i32>} : memref<1x128xf32, #tpu.memory_space<vmem>>, vector<1x128xf32>,
    return
  }
  func.func @transform_0(%arg0: i32) -> (i32, i32) {
    %c0_i32 = arith.constant 0 : i32
    %c0_i32_0 = arith.constant 0 : i32
    %c0_i32_1 = arith.constant 0 : i32
    return %c0_i32, %c0_i32_0 : i32, i32
  }
  func.func @transform_1(%arg0: i32) -> (i32, i32) {
    %c0_i32 = arith.constant 0 : i32
    %c0_i32_0 = arith.constant 0 : i32
    %c0_i32_1 = arith.constant 0 : i32
    return %c0_i32, %c0_i32_0 : i32, i32
  }
  func.func @transform_2(%arg0: i32) -> (i32, i32) {
    %c0_i32 = arith.constant 0 : i32
    %c0_i32_0 = arith.constant 0 : i32
    %c0_i32_1 = arith.constant 0 : i32
    return %c0_i32, %c0_i32_0 : i32, i32
  }
  func.func @transform_3(%arg0: i32) -> (i32, i32) {
    %c0_i32 = arith.constant 0 : i32
    %c0_i32_0 = arith.constant 0 : i32
    %c0_i32_1 = arith.constant 0 : i32
    return %c0_i32, %c0_i32_0 : i32, i32
  }
  func.func @transform_4(%arg0: i32) -> (i32, i32) {
    %c0_i32 = arith.constant 0 : i32
    %c0_i32_0 = arith.constant 0 : i32
    %c0_i32_1 = arith.constant 0 : i32
    return %c0_i32, %c0_i32_0 : i32, i32
  }
  func.func @transform_5(%arg0: i32) -> (i32, i32) {
    %c0_i32 = arith.constant 0 : i32
    %c0_i32_0 = arith.constant 0 : i32
    %c0_i32_1 = arith.constant 0 : i32
    return %c0_i32, %c0_i32_0 : i32, i32
  }
  func.func @transform_6(%arg0: i32) -> (i32, i32) {
    %c0_i32 = arith.constant 0 : i32
    %c0_i32_0 = arith.constant 0 : i32
    return %arg0, %c0_i32 : i32, i32
  }
  func.func @transform_7(%arg0: i32) -> (i32, i32) {
    %c0_i32 = arith.constant 0 : i32
    %c0_i32_0 = arith.constant 0 : i32
    return %c0_i32, %arg0 : i32, i32
  }
}

</mosaic_0001>

<bundles_post_ra>
// kernel: tpu_custom_call.1
= control target key start
LH: loop header
LB: loop body
LE: loop exit
PB: predicated region body
PF: predicated region fallthrough
CT: control target
= control target key end

     0   :  { %s1750_s0 = inlined_call_operand.vmem [shape: bf16[128,16], index: 0, kind: input, shape index: {}]   ;;  %s1751_s1 = inlined_call_operand.vmem [shape: f32[128,1], index: 1, kind: input, shape index: {}]   ;;  %s1752_s2 = inlined_call_operand.vmem [shape: bf16[128,128], index: 2, kind: input, shape index: {}]   ;;  %s1753_s3 = inlined_call_operand.vmem [shape: f32[128,1], index: 3, kind: input, shape index: {}]   ;;  %s1754_s4 = inlined_call_operand.vmem [shape: f32[128,1], index: 4, kind: input, shape index: {}]   ;;  %s1755_s5 = inlined_call_operand.<no memory space> [shape: f32[1,1], index: 5, kind: input, shape index: {}]   ;;  %s1756_s6 = inlined_call_operand.vmem [shape: f32[256,16], index: 6, kind: input, shape index: {}]   ;;  %s1757_s7 = inlined_call_operand.hbm [shape: f32[1,256], index: 7, kind: output, shape index: {}]  }
   0x1   :  { %v12_v0 = vstv %s1755_s5 }
   0x2   :  { %13 = vst [vmem:[#allocation2] sm:$0x1] %v12_v0 }
   0x3   :  { %14 = vsyncpa [#allocation4], 0 }
   0x4   :  { %16 = vsyncpa [#allocation4 + $0x1], 0  ;;  %s1417_s26 = smov 0   ;;  %s1419_s27 = smov 0  }
   0x5   :  { %s1421_s28 = smov 0   ;;  %s1423_s29 = smov 0  }
   0x6 LB: > { %s1112_s5 = sadd.s32 4294967295, %s1370_s29   ;;  %s1113_s30 = sadd.s32 4294967294, %s1370_s29   ;;  %s1370_s29 = sphi %s1423_s29, %s1763_s29   ;;  %s1366_s28 = sphi %s1421_s28, %s1762_s28   ;;  %s1362_s27 = sphi %s1419_s27, %s1761_s27   ;;  %s1358_s26 = sphi %s1417_s26, %s1760_s26  }
   0x7   : > { %s1440_s8 = sadd.s32 1, %s1370_s29   ;;  %s181_s9 = sadd.s32 1, %s1366_s28 }
   0x8   : > { %s178_s10 = ssub.s32 %s1370_s29, %s1440_s8  ;;  %p191_p0 = scmp.ne.s32.totalorder %s1366_s28, %s1362_s27 }
   0x9   : > { %p179_p1 = scmp.eq.s32.totalorder %s178_s10, 0  ;;  %p192_p2 = scmp.eq.s32.totalorder %s1112_s5, 1 }
   0xa   : > { %p197_p3 = scmp.ne.s32.totalorder %s1362_s27, %s1358_s26  ;;  %p198_p4 = scmp.eq.s32.totalorder %s1113_s30, 1 }
   0xb   : > { %s1450_s11 = scalar_select %p179_p1, %s1366_s28, %s181_s9  }
   0xc   : > { %p1452_p5 = por %p192_p2, %p191_p0  ;;  %p1456_p6 = por %p198_p4, %p197_p3 }
   0xd   : > { %p1116_p7 = scmp.ge.s32.totalorder %s1370_s29, 1  ;;  %p243_p8 = scmp.lt.s32.totalorder %s1370_s29, 3 }
   0xf   : > { %p244_p9 = pnand %p1116_p7, %p243_p8 }
  0x10   : > { %s1462_s14 = sshll.u32 (!%p244_p9), %s1112_s5, 4  ;;  %v321_v1 = vld [vmem:[%s1751_s1] sm:$0xff] (!%p244_p9)  ;;  %v323_v2 = vld [vmem:[%s1751_s1 + $0x10] sm:$0xff] (!%p244_p9)  ;;  %v1372_v3 = vmov (!%p244_p9), 0   ;;  %v322_v4 = vld [vmem:[%s1751_s1 + $0x8] sm:$0xff] (!%p244_p9)  ;;  %vm457_vm0 = vcmask (!%p244_p9), 130048  }
  0x11   : > { %247 = sbr.rel (%p244_p9) target bundleno = 627 (0x273), region = 48  ;;  %p275_p10 = scmp.lt.s32.totalorder (!%p244_p9), %s1462_s14, 31  ;;  %1290 = vset.pattern.permute.xlu0 (!%p244_p9), %v1372_v3  ;;  %1291 = vset.pattern.permute.xlu1 (!%p244_p9), %v1372_v3  ;;  %v1292_v5 = vld [vmem:[%s1750_s0] sm:$0xff] (!%p244_p9)   ;;  %v324_v6 = vld [vmem:[%s1751_s1 + $0x18] sm:$0xff] (!%p244_p9)  ;;  %v326_v13 = vld [vmem:[%s1751_s1 + $0x28] sm:$0xff] (!%p244_p9) }
  0x12   : > { %339 = vperm.xlu0 (!%p244_p9), %1290, %v321_v1   ;;  %349 = vperm.xlu1 (!%p244_p9), %1291, %v323_v2   ;;  %v325_v7 = vld [vmem:[%s1751_s1 + $0x20] sm:$0xff] (!%p244_p9)  ;;  %v327_v16 = vld [vmem:[%s1751_s1 + $0x30] sm:$0xff] (!%p244_p9)  ;;  %v328_v17 = vld [vmem:[%s1751_s1 + $0x38] sm:$0xff] (!%p244_p9)  ;;  %s272_s16 = sand.u32 (!%p244_p9), 1, %s1362_s27   ;;  %s1708_s21 = scalar_lea.hbm (!%p244_p9), %s1757_s7, %s1462_s14 }
  0x13   : > { %1194 = vmatprep.mubr.msk.bf16.mxu0 (!%p244_p9), %vm457_vm0, %v1292_v5  ;;  %v329_v20 = vld [vmem:[%s1751_s1 + $0x40] sm:$0xff] (!%p244_p9)  ;;  %v330_v23 = vld [vmem:[%s1751_s1 + $0x48] sm:$0xff] (!%p244_p9)  ;;  %v331_v24 = vld [vmem:[%s1751_s1 + $0x50] sm:$0xff] (!%p244_p9)  ;;  %s273_s17 = scalar_lea.vmem (!%p244_p9), [#allocation3], %s272_s16  ;;  %s1046_s22 = scalar_lea.sflag (!%p244_p9), [#allocation4], %s272_s16 }
  0x14   : > { %v332_v25 = vld [vmem:[%s1751_s1 + $0x58] sm:$0xff] (!%p244_p9)  ;;  %v333_v28 = vld [vmem:[%s1751_s1 + $0x60] sm:$0xff] (!%p244_p9)  ;;  %v334_v31 = vld [vmem:[%s1751_s1 + $0x68] sm:$0xff] (!%p244_p9)  ;;  %s1058_s18 = sshll.u32 (!%p244_p9), %s273_s17, 4  ;;  %s1373_s24 = smov (!%p244_p9), [#allocation3]   ;;  %s1710_s18 = int_to_ptr.vmem [resolvable:$true] %s1058_s18 }
  0x15   : > { %v335_v32 = vld [vmem:[%s1751_s1 + $0x70] sm:$0xff] (!%p244_p9)  ;;  %v336_v34 = vld [vmem:[%s1751_s1 + $0x78] sm:$0xff] (!%p244_p9)  ;;  %v643_v37 = vld [vmem:[%s1753_s3] sm:$0xff] (!%p244_p9)  ;;  %s1312_s25 = sshll.u32 (!%p244_p9), %s1373_s24, 4  ;;  %s1313_s25 = int_to_ptr.vmem [resolvable:$false] %s1312_s25 }
  0x16   : > { %344 = vperm.xlu0 (!%p244_p9), %1290, %v322_v4   ;;  %354 = vperm.xlu1 (!%p244_p9), %1291, %v324_v6   ;;  %v644_v38 = vld [vmem:[%s1753_s3 + $0x8] sm:$0xff] (!%p244_p9)  ;;  %v645_v40 = vld [vmem:[%s1753_s3 + $0x10] sm:$0xff] (!%p244_p9)  ;;  %v646_v41 = vld [vmem:[%s1753_s3 + $0x18] sm:$0xff] (!%p244_p9)  ;;  %p1315_p0 = scmp.lt.s32.totalorder (!%p244_p9), %s1710_s18, %s1313_s25 }
  0x17   : > { %v647_v44 = vld [vmem:[%s1753_s3 + $0x20] sm:$0xff] (!%p244_p9)  ;;  %v901_v48 = vld [vmem:[%s1754_s4 + $0x8] sm:$0xff] (!%p244_p9)  ;;  %v902_v49 = vld [vmem:[%s1754_s4 + $0x10] sm:$0xff] (!%p244_p9) }
  0x18   : > { %s276_s23 = scalar_select %p275_p10, %s1462_s14, 31  ;;  %v900_v47 = vld [vmem:[%s1754_s4] sm:$0xff]  ;;  %v648_v52 = vld [vmem:[%s1753_s3 + $0x28] sm:$0xff]  ;;  %v903_v55 = vld [vmem:[%s1754_s4 + $0x18] sm:$0xff] }
  0x19   : > { %v649_v56 = vld [vmem:[%s1753_s3 + $0x30] sm:$0xff]  ;;  %v904_v57 = vld [vmem:[%s1754_s4 + $0x20] sm:$0xff]  ;;  %v650_v60 = vld [vmem:[%s1753_s3 + $0x38] sm:$0xff] }
  0x1a   : > { %s1118_s5 = sshll.u32 %s276_s23, 3  ;;  %359 = vperm.xlu0 %1290, %v325_v7   ;;  %364 = vperm.xlu1 %1291, %v326_v13   ;;  %v905_v63 = vld [vmem:[%s1754_s4 + $0x28] sm:$0xff]  ;;  %v651_v0 = vld [vmem:[%s1753_s3 + $0x40] sm:$0xff]  ;;  %v906_v1 = vld [vmem:[%s1754_s4 + $0x30] sm:$0xff]  ;;  %s1308_s23 = scalar_lea.vmem %s1710_s18, 16 }
  0x1b   : > { %s1485_s10 = scalar_lea.vmem %s1756_s6, %s1118_s5  ;;  %v652_v2 = vld [vmem:[%s1753_s3 + $0x48] sm:$0xff]  ;;  %v907_v4 = vld [vmem:[%s1754_s4 + $0x38] sm:$0xff]  ;;  %v653_v5 = vld [vmem:[%s1753_s3 + $0x50] sm:$0xff]  ;;  %p1309_p11 = scmp.ne.s32.totalorder %s1710_s18, %s1308_s23 }
  0x1c   : > { %v281_v8 = vld [vmem:[%s1485_s10] sm:$0xff]  ;;  %v282_v9 = vld [vmem:[%s1485_s10 + $0x8] sm:$0xff]  ;;  %v283_v10 = vld [vmem:[%s1485_s10 + $0x10] sm:$0xff]  ;;  %s1314_s5 = scalar_lea.vmem %s1313_s25, 32 }
  0x1d   : > { %v297_v11 = vpack.c.bf16 %v282_v9, %v281_v8  ;;  %v284_v12 = vld [vmem:[%s1485_s10 + $0x18] sm:$0xff]  ;;  %v285_v18 = vld [vmem:[%s1485_s10 + $0x20] sm:$0xff]  ;;  %v286_v19 = vld [vmem:[%s1485_s10 + $0x28] sm:$0xff]  ;;  %p1310_p12 = pnand %p1309_p11, %p1452_p5  ;;  %p1316_p1 = scmp.lt.s32.totalorder %s1314_s5, %s1308_s23 }
  0x1e   : > { %v298_v14 = vpack.c.bf16 %v284_v12, %v283_v10  ;;  %369 = vperm.xlu0 %1290, %v327_v16   ;;  %374 = vperm.xlu1 %1291, %v328_v17   ;;  %v299_v22 = vpack.c.bf16 %v286_v19, %v285_v18  ;;  %v287_v26 = vld [vmem:[%s1485_s10 + $0x30] sm:$0xff]  ;;  %v288_v27 = vld [vmem:[%s1485_s10 + $0x38] sm:$0xff]  ;;  %v289_v33 = vld [vmem:[%s1485_s10 + $0x40] sm:$0xff] }
  0x1f   : > { %1242 = vmatprep.subr.msk.bf16.mxu0 %vm457_vm0, %v297_v11  ;;  %v483_v15 = vsel %vm457_vm0, %v297_v11, 0  ;;  %v300_v30 = vpack.c.bf16 %v288_v27, %v287_v26  ;;  %v290_v36 = vld [vmem:[%s1485_s10 + $0x48] sm:$0xff]  ;;  %v291_v42 = vld [vmem:[%s1485_s10 + $0x50] sm:$0xff]  ;;  %v292_v43 = vld [vmem:[%s1485_s10 + $0x58] sm:$0xff]  ;;  %p1311_p13 = pneg %p1310_p12  ;;  %p1317_p2 = por %p1316_p1, %p1315_p0 }
  0x20   : > { %1179 = vmatpush3.bf16.xpose.msra.mxu0 %v483_v15  ;;  %v486_v21 = vsel %vm457_vm0, %v298_v14, 0  ;;  %v489_v29 = vsel %vm457_vm0, %v299_v22, 0  ;;  %v301_v39 = vpack.c.bf16 %v290_v36, %v289_v33  ;;  %v302_v46 = vpack.c.bf16 %v292_v43, %v291_v42  ;;  %v293_v50 = vld [vmem:[%s1485_s10 + $0x60] sm:$0xff]  ;;  %v294_v51 = vld [vmem:[%s1485_s10 + $0x68] sm:$0xff]  ;;  %v295_v58 = vld [vmem:[%s1485_s10 + $0x70] sm:$0xff] }
  0x21   : > { %1243 = vmatprep.subr.msk.bf16.mxu0 %vm457_vm0, %v298_v14  ;;  %v492_v35 = vsel %vm457_vm0, %v300_v30, 0  ;;  %v303_v54 = vpack.c.bf16 %v294_v51, %v293_v50  ;;  %v296_v59 = vld [vmem:[%s1485_s10 + $0x78] sm:$0xff]  ;;  %v908_v6 = vld [vmem:[%s1754_s4 + $0x40] sm:$0xff]  ;;  %v1293_v7 = vld [vmem:[%s1750_s0 + $0x8] sm:$0xff]   ;;  %p1318_p3 = pnand %p1317_p2, %p1311_p13 }
  0x22   : > { %379 = vperm.xlu0 %1290, %v329_v20   ;;  %384 = vperm.xlu1 %1291, %v330_v23   ;;  %v495_v45 = vsel %vm457_vm0, %v301_v39, 0  ;;  %v498_v53 = vsel %vm457_vm0, %v302_v46, 0  ;;  %v304_v62 = vpack.c.bf16 %v296_v59, %v295_v58  ;;  %v1294_v8 = vld [vmem:[%s1750_s0 + $0x10] sm:$0xff]   ;;  %v654_v9 = vld [vmem:[%s1753_s3 + $0x58] sm:$0xff]  ;;  %v909_v10 = vld [vmem:[%s1754_s4 + $0x48] sm:$0xff] }
  0x23   : > { %v501_v61 = vsel %vm457_vm0, %v303_v54, 0  ;;  %v655_v11 = vld [vmem:[%s1753_s3 + $0x60] sm:$0xff]  ;;  %v910_v12 = vld [vmem:[%s1754_s4 + $0x50] sm:$0xff]  ;;  %v1295_v13 = vld [vmem:[%s1750_s0 + $0x18] sm:$0xff]  }
  0x24   : > { %v504_v3 = vsel %vm457_vm0, %v304_v62, 0  ;;  %v1296_v14 = vld [vmem:[%s1750_s0 + $0x20] sm:$0xff]   ;;  %v656_v15 = vld [vmem:[%s1753_s3 + $0x68] sm:$0xff]  ;;  %v911_v16 = vld [vmem:[%s1754_s4 + $0x58] sm:$0xff] }
  0x25   : > { %v657_v17 = vld [vmem:[%s1753_s3 + $0x70] sm:$0xff]  ;;  %v912_v18 = vld [vmem:[%s1754_s4 + $0x60] sm:$0xff]  ;;  %v1297_v19 = vld [vmem:[%s1750_s0 + $0x28] sm:$0xff]  }
  0x26   : > { %389 = vperm.xlu0 %1290, %v331_v24   ;;  %394 = vperm.xlu1 %1291, %v332_v25   ;;  %v1298_v20 = vld [vmem:[%s1750_s0 + $0x30] sm:$0xff]   ;;  %v915_v24 = vld [vmem:[%s1754_s4 + $0x78] sm:$0xff]  ;;  %v1033_v26 = vld [vmem:[#allocation2] sm:$0x1] }
  0x27   : > { %v914_v23 = vld [vmem:[%s1754_s4 + $0x70] sm:$0xff]  ;;  %v1299_v25 = vld [vmem:[%s1750_s0 + $0x38] sm:$0xff]   ;;  %v1300_v27 = vld [vmem:[%s1752_s2] sm:$0xff]  }
  0x28   : > { %1181 = vmatpush3.bf16.xpose.msra.mxu0 %v486_v21  ;;  %v658_v21 = vld [vmem:[%s1753_s3 + $0x78] sm:$0xff]  ;;  %1226 = vmatprep.mubr.bf16.mxu1 %v1300_v27 }
  0x29   : > { %1244 = vmatprep.subr.msk.bf16.mxu0 %vm457_vm0, %v299_v22  ;;  %v913_v22 = vld [vmem:[%s1754_s4 + $0x68] sm:$0xff] }
  0x2a   : > { %399 = vperm.xlu0 %1290, %v333_v28   ;;  %404 = vperm.xlu1 %1291, %v334_v31  }
  0x2e   : > { %409 = vperm.xlu0 %1290, %v335_v32   ;;  %414 = vperm.xlu1 %1291, %v336_v34  }
  0x30   : > { %1183 = vmatpush3.bf16.xpose.msra.mxu0 %v489_v29 }
  0x31   : > { %1245 = vmatprep.subr.msk.bf16.mxu0 %vm457_vm0, %v300_v30 }
  0x32   : > { %661 = vperm.xlu0 %1290, %v643_v37   ;;  %666 = vperm.xlu1 %1291, %v644_v38  }
  0x36   : > { %671 = vperm.xlu0 %1290, %v645_v40   ;;  %676 = vperm.xlu1 %1291, %v646_v41  }
  0x38   : > { %1185 = vmatpush3.bf16.xpose.msra.mxu0 %v492_v35 }
  0x39   : > { %1246 = vmatprep.subr.msk.bf16.mxu0 %vm457_vm0, %v301_v39 }
  0x3a   : > { %681 = vperm.xlu0 %1290, %v647_v44   ;;  %918 = vperm.xlu1 %1291, %v900_v47  }
  0x3e   : > { %923 = vperm.xlu0 %1290, %v901_v48   ;;  %928 = vperm.xlu1 %1291, %v902_v49  }
  0x40   : > { %1187 = vmatpush3.bf16.xpose.msra.mxu0 %v495_v45 }
  0x41   : > { %1247 = vmatprep.subr.msk.bf16.mxu0 %vm457_vm0, %v302_v46 }
  0x42   : > { %686 = vperm.xlu0 %1290, %v648_v52   ;;  %933 = vperm.xlu1 %1291, %v903_v55  }
  0x46   : > { %691 = vperm.xlu0 %1290, %v649_v56   ;;  %938 = vperm.xlu1 %1291, %v904_v57  }
  0x48   : > { %1189 = vmatpush3.bf16.xpose.msra.mxu0 %v498_v53 }
  0x49   : > { %1248 = vmatprep.subr.msk.bf16.mxu0 %vm457_vm0, %v303_v54 }
  0x4a   : > { %696 = vperm.xlu0 %1290, %v650_v60   ;;  %943 = vperm.xlu1 %1291, %v905_v63  }
  0x4e   : > { %701 = vperm.xlu0 %1290, %v651_v0   ;;  %948 = vperm.xlu1 %1291, %v906_v1  }
  0x50   : > { %1191 = vmatpush3.bf16.xpose.msra.mxu0 %v501_v61 }
  0x51   : > { %1249 = vmatprep.subr.msk.bf16.mxu0 %vm457_vm0, %v304_v62 }
  0x52   : > { %706 = vperm.xlu0 %1290, %v652_v2   ;;  %953 = vperm.xlu1 %1291, %v907_v4  }
  0x56   : > { %711 = vperm.xlu0 %1290, %v653_v5   ;;  %958 = vperm.xlu1 %1291, %v908_v6  }
  0x58   : > { %1193 = vmatpush3.bf16.xpose.msra.mxu0 %v504_v3 }
  0x5a   : > { %716 = vperm.xlu0 %1290, %v654_v9   ;;  %963 = vperm.xlu1 %1291, %v909_v10  }
  0x5e   : > { %721 = vperm.xlu0 %1290, %v655_v11   ;;  %968 = vperm.xlu1 %1291, %v910_v12  }
  0x5f   : > { %1195 = vmatmul.mubr.msk.bf16.vlgmr.msra.gmra.mrb[0].mxu0 %vm457_vm0, %v1293_v7 }
  0x60   : > { %1198 = vmatprep.mubr.msk.bf16.mxu0 %vm457_vm0, %v1294_v8 }
  0x62   : > { %726 = vperm.xlu0 %1290, %v656_v15   ;;  %973 = vperm.xlu1 %1291, %v911_v16  }
  0x66   : > { %731 = vperm.xlu0 %1290, %v657_v17   ;;  %978 = vperm.xlu1 %1291, %v912_v18  }
  0x67   : > { %1199 = vmatmul.mubr.msk.bf16.gmra.mrb[4].mxu0 %vm457_vm0, %v1295_v13 }
  0x68   : > { %1202 = vmatprep.mubr.msk.bf16.mxu0 %vm457_vm0, %v1296_v14 }
  0x6a   : > { %736 = vperm.xlu0 %1290, %v658_v21   ;;  %983 = vperm.xlu1 %1291, %v913_v22  }
  0x6e   : > { %988 = vperm.xlu0 %1290, %v914_v23   ;;  %993 = vperm.xlu1 %1291, %v915_v24  }
  0x6f   : > { %1203 = vmatmul.mubr.msk.bf16.gmra.mrb[8].mxu0 %vm457_vm0, %v1297_v19 }
  0x70   : > { %1206 = vmatprep.mubr.msk.bf16.mxu0 %vm457_vm0, %v1298_v20 }
  0x72   : > { %1036 = vperm.xlu0 %1290, %v1033_v26  }
  0x77   : > { %1207 = vmatmul.mubr.msk.bf16.gmra.mrb[12].mxu0 %vm457_vm0, %v1299_v25 }
  0x91   : > { %v340_v28 = vpop.permute.xlu0 %339  ;;  %v350_v29 = vpop.permute.xlu1 %349 }
  0x95   : > { %v345_v30 = vpop.permute.xlu0 %344  ;;  %v355_v31 = vpop.permute.xlu1 %354 }
  0x99   : > { %v360_v32 = vpop.permute.xlu0 %359  ;;  %v365_v33 = vpop.permute.xlu1 %364 }
  0x9d   : > { %v370_v34 = vpop.permute.xlu0 %369  ;;  %v375_v38 = vpop.permute.xlu1 %374 }
  0xa1   : > { %v380_v46 = vpop.permute.xlu0 %379  ;;  %v385_v50 = vpop.permute.xlu1 %384 }
  0xa5   : > { %v390_v59 = vpop.permute.xlu0 %389  ;;  %v395_v63 = vpop.permute.xlu1 %394 }
  0xa9   : > { %v400_v7 = vpop.permute.xlu0 %399  ;;  %v405_v12 = vpop.permute.xlu1 %404 }
  0xad   : > { %v410_v19 = vpop.permute.xlu0 %409  ;;  %v415_v24 = vpop.permute.xlu1 %414 }
 0x132   : > { %v1196_v35 = vpop.f32.mrb[0].mxu0 }
 0x133   : > { %v549_v36 = vadd.f32 %v1196_v35, %v350_v29  ;;  %v540_v37 = vpop.f32.mrb[1].mxu0 }
 0x134   : > { %v541_v39 = vadd.f32 %v540_v37, %v340_v28  ;;  %v1197_v40 = vpop.f32.mrb[2].mxu0  ;;  %v1302_v37 = vld [vmem:[%s1752_s2 + $0x10] sm:$0xff]  }
 0x135   : > { %v552_v41 = vadd.f32 %v1197_v40, %v355_v31  ;;  %v543_v42 = vpop.f32.mrb[3].mxu0  ;;  %v605_v44 = vmax.f32 %v549_v36, 0.0  ;;  %v1301_v36 = vld [vmem:[%s1752_s2 + $0x8] sm:$0xff]  }
 0x136   : > { %v544_v43 = vadd.f32 %v543_v42, %v345_v30  ;;  %v603_v47 = vmax.f32 %v541_v39, 0.0  ;;  %v1304_v39 = vld [vmem:[%s1752_s2 + $0x20] sm:$0xff]   ;;  %v1305_v40 = vld [vmem:[%s1752_s2 + $0x28] sm:$0xff]   ;;  %v1307_v42 = vld [vmem:[%s1752_s2 + $0x38] sm:$0xff]  }
 0x137   : > { %v606_v45 = vmax.f32 %v552_v41, 0.0  ;;  %v1306_v41 = vld [vmem:[%s1752_s2 + $0x30] sm:$0xff]  }
 0x138   : > { %v604_v48 = vmax.f32 %v544_v43, 0.0  ;;  %v662_v43 = vpop.permute.xlu0 %661 }
 0x139   : > { %v636_v49 = vpack.c.bf16 %v606_v45, %v605_v44  ;;  %v667_v44 = vpop.permute.xlu1 %666 }
 0x13a   : > { %v1200_v51 = vpop.f32.mrb[4].mxu0  ;;  %v635_v52 = vpack.c.bf16 %v604_v48, %v603_v47 }
 0x13b   : > { %v565_v53 = vadd.f32 %v1200_v51, %v370_v34  ;;  %v556_v54 = vpop.f32.mrb[5].mxu0 }
 0x13c   : > { %v557_v55 = vadd.f32 %v556_v54, %v360_v32  ;;  %v1201_v56 = vpop.f32.mrb[6].mxu0  ;;  %1210 = vmatprep.subr.bf16.mxu1 %v635_v52  ;;  %v672_v45 = vpop.permute.xlu0 %671 }
 0x13d   : > { %v568_v57 = vadd.f32 %v1201_v56, %v375_v38  ;;  %v559_v58 = vpop.f32.mrb[7].mxu0  ;;  %1211 = vmatpush3.bf16.msra.mxu1 %v635_v52  ;;  %v609_v61 = vmax.f32 %v565_v53, 0.0  ;;  %v1303_v38 = vld [vmem:[%s1752_s2 + $0x18] sm:$0xff]  }
 0x13e   : > { %v560_v60 = vadd.f32 %v559_v58, %v365_v33  ;;  %1212 = vmatprep.subr.bf16.mxu1 %v636_v49  ;;  %v607_v0 = vmax.f32 %v557_v55, 0.0 }
 0x13f   : > { %v610_v62 = vmax.f32 %v568_v57, 0.0 }
 0x140   : > { %v608_v1 = vmax.f32 %v560_v60, 0.0  ;;  %v682_v47 = vpop.permute.xlu0 %681 }
 0x141   : > { %v638_v2 = vpack.c.bf16 %v610_v62, %v609_v61  ;;  %1213 = vmatpush3.bf16.msra.mxu1 %v636_v49 }
 0x142   : > { %v637_v3 = vpack.c.bf16 %v608_v1, %v607_v0  ;;  %v1204_v4 = vpop.f32.mrb[8].mxu0 }
 0x143   : > { %v581_v5 = vadd.f32 %v1204_v4, %v390_v59  ;;  %v572_v6 = vpop.f32.mrb[9].mxu0 }
 0x144   : > { %v573_v8 = vadd.f32 %v572_v6, %v380_v46  ;;  %v1205_v9 = vpop.f32.mrb[10].mxu0  ;;  %1214 = vmatprep.subr.bf16.mxu1 %v637_v3  ;;  %v677_v46 = vpop.permute.xlu1 %676 }
 0x145   : > { %v584_v10 = vadd.f32 %v1205_v9, %v395_v63  ;;  %v575_v11 = vpop.f32.mrb[11].mxu0  ;;  %1215 = vmatpush3.bf16.msra.mxu1 %v637_v3  ;;  %v613_v14 = vmax.f32 %v581_v5, 0.0  ;;  %v924_v49 = vpop.permute.xlu0 %923 }
 0x146   : > { %v576_v13 = vadd.f32 %v575_v11, %v385_v50  ;;  %1216 = vmatprep.subr.bf16.mxu1 %v638_v2  ;;  %v611_v16 = vmax.f32 %v573_v8, 0.0 }
 0x147   : > { %v614_v15 = vmax.f32 %v584_v10, 0.0 }
 0x148   : > { %v612_v17 = vmax.f32 %v576_v13, 0.0  ;;  %v919_v48 = vpop.permute.xlu1 %918 }
 0x149   : > { %v640_v18 = vpack.c.bf16 %v614_v15, %v613_v14  ;;  %1217 = vmatpush3.bf16.msra.mxu1 %v638_v2  ;;  %v687_v51 = vpop.permute.xlu0 %686 }
 0x14a   : > { %v639_v20 = vpack.c.bf16 %v612_v17, %v611_v16  ;;  %v1208_v21 = vpop.f32.mrb[12].mxu0 }
 0x14b   : > { %v597_v22 = vadd.f32 %v1208_v21, %v410_v19  ;;  %v588_v23 = vpop.f32.mrb[13].mxu0 }
 0x14c   : > { %v589_v25 = vadd.f32 %v588_v23, %v400_v7  ;;  %v1209_v26 = vpop.f32.mrb[14].mxu0  ;;  %1218 = vmatprep.subr.bf16.mxu1 %v639_v20  ;;  %v929_v50 = vpop.permute.xlu1 %928 }
 0x14d   : > { %v600_v27 = vadd.f32 %v1209_v26, %v415_v24  ;;  %v591_v28 = vpop.f32.mrb[15].mxu0  ;;  %1219 = vmatpush3.bf16.msra.mxu1 %v639_v20  ;;  %v617_v30 = vmax.f32 %v597_v22, 0.0  ;;  %v692_v53 = vpop.permute.xlu0 %691 }
 0x14e   : > { %v592_v29 = vadd.f32 %v591_v28, %v405_v12  ;;  %1220 = vmatprep.subr.bf16.mxu1 %v640_v18  ;;  %v615_v32 = vmax.f32 %v589_v25, 0.0 }
 0x14f   : > { %v618_v31 = vmax.f32 %v600_v27, 0.0 }
 0x150   : > { %v616_v33 = vmax.f32 %v592_v29, 0.0  ;;  %v934_v52 = vpop.permute.xlu1 %933 }
 0x151   : > { %v642_v34 = vpack.c.bf16 %v618_v31, %v617_v30  ;;  %1221 = vmatpush3.bf16.msra.mxu1 %v640_v18  ;;  %v697_v55 = vpop.permute.xlu0 %696 }
 0x152   : > { %v641_v35 = vpack.c.bf16 %v616_v33, %v615_v32 }
 0x154   : > { %1222 = vmatprep.subr.bf16.mxu1 %v641_v35  ;;  %v939_v54 = vpop.permute.xlu1 %938 }
 0x155   : > { %1223 = vmatpush3.bf16.msra.mxu1 %v641_v35  ;;  %v702_v57 = vpop.permute.xlu0 %701 }
 0x156   : > { %1224 = vmatprep.subr.bf16.mxu1 %v642_v34 }
 0x158   : > { %v944_v56 = vpop.permute.xlu1 %943 }
 0x159   : > { %1225 = vmatpush3.bf16.msra.mxu1 %v642_v34  ;;  %v707_v59 = vpop.permute.xlu0 %706 }
 0x15c   : > { %1227 = vmatmul.mubr.bf16.vlgmr.msra.gmra.mrb[0].mxu1 %v1301_v36  ;;  %v949_v58 = vpop.permute.xlu1 %948 }
 0x15d   : > { %1230 = vmatprep.mubr.bf16.mxu1 %v1302_v37  ;;  %v712_v61 = vpop.permute.xlu0 %711 }
 0x160   : > { %v954_v60 = vpop.permute.xlu1 %953 }
 0x161   : > { %v717_v4 = vpop.permute.xlu0 %716 }
 0x164   : > { %1231 = vmatmul.mubr.bf16.gmra.mrb[4].mxu1 %v1303_v38  ;;  %v959_v62 = vpop.permute.xlu1 %958 }
 0x165   : > { %1234 = vmatprep.mubr.bf16.mxu1 %v1304_v39  ;;  %v722_v16 = vpop.permute.xlu0 %721 }
 0x168   : > { %v964_v9 = vpop.permute.xlu1 %963 }
 0x169   : > { %v727_v34 = vpop.permute.xlu0 %726 }
 0x16c   : > { %1235 = vmatmul.mubr.bf16.gmra.mrb[8].mxu1 %v1305_v40  ;;  %v969_v23 = vpop.permute.xlu1 %968 }
 0x16d   : > { %1238 = vmatprep.mubr.bf16.mxu1 %v1306_v41 }
 0x170   : > { %v974_v39 = vpop.permute.xlu1 %973 }
 0x174   : > { %1239 = vmatmul.mubr.bf16.gmra.mrb[12].mxu1 %v1307_v42 }
 0x22f   : > { %v1228_v63 = vpop.f32.mrb[0].mxu1 }
 0x230   : > { %v821_v0 = vpop.f32.mrb[1].mxu1  ;;  %v830_v1 = vadd.f32 %v1228_v63, %v672_v45 }
 0x231   : > { %v822_v2 = vadd.f32 %v821_v0, %v662_v43  ;;  %v1229_v3 = vpop.f32.mrb[2].mxu1 }
 0x232   : > { %v833_v5 = vadd.f32 %v1229_v3, %v677_v46  ;;  %v824_v6 = vpop.f32.mrb[3].mxu1  ;;  %v886_v10 = vmax.f32 %v830_v1, 0.0 }
 0x233   : > { %v884_v7 = vmax.f32 %v822_v2, 0.0  ;;  %v825_v8 = vadd.f32 %v824_v6, %v667_v44 }
 0x234   : > { %v887_v12 = vmax.f32 %v833_v5, 0.0  ;;  %v998_v18 = vmul.f32 %v929_v50, %v886_v10 }
 0x235   : > { %v885_v11 = vmax.f32 %v825_v8, 0.0  ;;  %v996_v13 = vmul.f32 %v919_v48, %v884_v7 }
 0x236   : > { %v999_v24 = vmul.f32 %v934_v52, %v887_v12  ;;  %v732_v52 = vpop.permute.xlu0 %731 }
 0x237   : > { %v997_v14 = vmul.f32 %v924_v49, %v885_v11  ;;  %v1232_v15 = vpop.f32.mrb[4].mxu1 }
 0x238   : > { %v837_v17 = vpop.f32.mrb[5].mxu1  ;;  %v846_v20 = vadd.f32 %v1232_v15, %v692_v53 }
 0x239   : > { %v1012_v19 = vadd.f32 %v997_v14, %v996_v13  ;;  %v838_v21 = vadd.f32 %v837_v17, %v682_v47  ;;  %v1233_v22 = vpop.f32.mrb[6].mxu1 }
 0x23a   : > { %v840_v25 = vpop.f32.mrb[7].mxu1  ;;  %v849_v28 = vadd.f32 %v1233_v22, %v697_v55  ;;  %v890_v30 = vmax.f32 %v846_v20, 0.0 }
 0x23b   : > { %v1013_v26 = vadd.f32 %v1012_v19, %v998_v18  ;;  %v888_v27 = vmax.f32 %v838_v21, 0.0  ;;  %v841_v29 = vadd.f32 %v840_v25, %v687_v51  ;;  %v1039_v25 = vlaneseq }
 0x23c   : > { %v891_v36 = vmax.f32 %v849_v28, 0.0  ;;  %v1002_v41 = vmul.f32 %v949_v58, %v890_v30 }
 0x23d   : > { %v1000_v31 = vmul.f32 %v939_v54, %v888_v27  ;;  %v1014_v32 = vadd.f32 %v1013_v26, %v999_v24  ;;  %v889_v33 = vmax.f32 %v841_v29, 0.0  ;;  %v1040_v28 = vshrl.u32 %v1039_v25, 7 }
 0x23e   : > { %v1003_v48 = vmul.f32 %v954_v60, %v891_v36  ;;  %v737_v60 = vpop.permute.xlu0 %736 }
 0x23f   : > { %v1015_v35 = vadd.f32 %v1014_v32, %v1000_v31  ;;  %v1001_v37 = vmul.f32 %v944_v56, %v889_v33  ;;  %v1236_v38 = vpop.f32.mrb[8].mxu1  ;;  %v979_v56 = vpop.permute.xlu1 %978  ;;  %v1041_v31 = vsub.s32 0, %v1040_v28 }
 0x240   : > { %v853_v40 = vpop.f32.mrb[9].mxu1  ;;  %v862_v43 = vadd.f32 %v1236_v38, %v712_v61 }
 0x241   : > { %v1016_v42 = vadd.f32 %v1015_v35, %v1001_v37  ;;  %v854_v44 = vadd.f32 %v853_v40, %v702_v57  ;;  %v1237_v45 = vpop.f32.mrb[10].mxu1 }
 0x242   : > { %v865_v46 = vadd.f32 %v1237_v45, %v717_v4  ;;  %v856_v47 = vpop.f32.mrb[11].mxu1  ;;  %v894_v53 = vmax.f32 %v862_v43, 0.0  ;;  %v989_v20 = vpop.permute.xlu0 %988 }
 0x243   : > { %v1017_v49 = vadd.f32 %v1016_v42, %v1002_v41  ;;  %v892_v50 = vmax.f32 %v854_v44, 0.0  ;;  %v857_v51 = vadd.f32 %v856_v47, %v707_v59  ;;  %v984_v12 = vpop.permute.xlu1 %983 }
 0x244   : > { %v895_v0 = vmax.f32 %v865_v46, 0.0  ;;  %v1006_v61 = vmul.f32 %v969_v23, %v894_v53 }
 0x245   : > { %v1004_v54 = vmul.f32 %v959_v62, %v892_v50  ;;  %v1018_v55 = vadd.f32 %v1017_v49, %v1003_v48  ;;  %v893_v63 = vmax.f32 %v857_v51, 0.0 }
 0x246   : > { %v1007_v7 = vmul.f32 %v974_v39, %v895_v0  ;;  %v1037_v33 = vpop.permute.xlu0 %1036 }
 0x247   : > { %v1019_v1 = vadd.f32 %v1018_v55, %v1004_v54  ;;  %v1005_v2 = vmul.f32 %v964_v9, %v893_v63  ;;  %v1240_v58 = vpop.f32.mrb[12].mxu1  ;;  %v994_v22 = vpop.permute.xlu1 %993  ;;  %v1042_v35 = vrot.slane %v1037_v33, %v1041_v31 }
 0x248   : > { %v869_v3 = vpop.f32.mrb[13].mxu1  ;;  %v878_v5 = vadd.f32 %v1240_v58, %v732_v52 }
 0x249   : > { %v1020_v57 = vadd.f32 %v1019_v1, %v1005_v2  ;;  %v870_v4 = vadd.f32 %v869_v3, %v722_v16  ;;  %v1241_v6 = vpop.f32.mrb[14].mxu1 }
 0x24a   : > { %v872_v8 = vpop.f32.mrb[15].mxu1  ;;  %v881_v11 = vadd.f32 %v1241_v6, %v737_v60  ;;  %v898_v13 = vmax.f32 %v878_v5, 0.0 }
 0x24b   : > { %v1021_v59 = vadd.f32 %v1020_v57, %v1006_v61  ;;  %v896_v10 = vmax.f32 %v870_v4, 0.0  ;;  %v873_v62 = vadd.f32 %v872_v8, %v727_v34 }
 0x24c   : > { %v899_v18 = vmax.f32 %v881_v11, 0.0  ;;  %v1010_v21 = vmul.f32 %v989_v20, %v898_v13 }
 0x24d   : > { %v1008_v14 = vmul.f32 %v979_v56, %v896_v10  ;;  %v1022_v15 = vadd.f32 %v1021_v59, %v1007_v7  ;;  %v897_v9 = vmax.f32 %v873_v62, 0.0 }
 0x24e   : > { %v1011_v23 = vmul.f32 %v994_v22, %v899_v18 }
 0x24f   : > { %v1023_v17 = vadd.f32 %v1022_v15, %v1008_v14  ;;  %v1009_v19 = vmul.f32 %v984_v12, %v897_v9 }
 0x251   : > { %v1024_v16 = vadd.f32 %v1023_v17, %v1009_v19 }
 0x253   : > { %v1025_v24 = vadd.f32 %v1024_v16, %v1010_v21 }
 0x255   : > { %v1026_v26 = vadd.f32 %v1025_v24, %v1011_v23 }
 0x257   : > { %v1027_v27 = vrot.slane %v1026_v26, 4 }
 0x259   : > { %v1028_v29 = vadd.f32 %v1027_v27, %v1026_v26 }
 0x25b   : > { %v1029_v30 = vrot.slane %v1028_v29, 2 }
 0x25d   : > { %v1030_v32 = vadd.f32 %v1029_v30, %v1028_v29 }
 0x25f   : > { %v1031_v34 = vrot.slane %v1030_v32, 1 }
 0x261   : > { %v1032_v36 = vadd.f32 %v1031_v34, %v1030_v32 }
 0x263   : > { %v1043_v37 = vadd.f32 %v1042_v35, %v1032_v36 }
 0x265   : > { %1044 = vst [vmem:[%s273_s17] sm:$0x1] %v1043_v37 }
 0x266   : > { %1321 = shalt.err (!%p1318_p3)
}
 0x267   : > { %s1322_s14 = scalar_lea.hbm %s1708_s21, 16  ;;  %s1326_s9 = scalar_lea.hbm %s1757_s7, 32 }
 0x268   : > { %p1323_p4 = scmp.ne.s32.totalorder %s1708_s21, %s1322_s14  ;;  %p1327_p9 = scmp.lt.u32.totalorder %s1708_s21, %s1757_s7 }
 0x269   : > { %p1328_p10 = scmp.lt.u32.totalorder %s1326_s9, %s1322_s14  ;;  %p1330_p12 = scmp.lt.u32.totalorder %s1322_s14, %s1708_s21 }
 0x26a   : > { %p1324_p7 = pnand %p1323_p4, %p1452_p5 }
 0x26b   : > { %p1329_p11 = por %p1328_p10, %p1327_p9 }
 0x26c   : > { %p1325_p8 = pneg %p1324_p7 }
 0x26d   : > { %p1331_p13 = por %p1330_p12, %p1329_p11 }
 0x26f   : > { %p1332_p0 = pnand %p1331_p13, %p1325_p8 }
 0x271   : > { %1335 = shalt.err (!%p1332_p0)
}
 0x272   : > { %1250 = dma.vmem_to_hbm [thread:$0]  (%p1452_p5), %s1710_s18, 16, %s1708_s21, %s1046_s22  }
 0x273 PF: > { %p1256_p1 = scmp.ge.s32.totalorder %s1370_s29, 2  ;;  %s1070_s17 = sand.u32 1, %s1358_s26  }
 0x274   : > { %s1071_s19 = scalar_lea.sflag [#allocation4], %s1070_s17 }
 0x275   : > { %p1253_p2 = pnand %p1256_p1, %p1456_p6 }
 0x277   : > { %1353 = dma.done.wait (!%p1253_p2), %s1071_s19, 16  }
 0x278   : > { %1355 = vsyncadd (!%p1253_p2), %s1071_s19, 4294967280  ;;  %p19_p3 = scmp.ge.s32.totalorder %s1440_s8, 4   ;;  %s1760_s26 = smov %s1362_s27 }
 0x279   : > { %s1761_s27 = smov %s1366_s28  ;;  %s1762_s28 = smov %s1450_s11 }
 0x27a   : > { %s1763_s29 = smov %s1440_s8  ;;  %21 = sbr.rel (!%p19_p3) target bundleno = 6 (0x6), region = 83 }
 0x281   :  { %1075 = vsyncpa [#allocation4], 1 }
 0x282   :  { %1077 = vsyncpa [#allocation4 + $0x1], 1 }

</bundles_post_ra>
